<compile_context>
chip_gen: v7x
topology: tpu7x:2x2x1
jax: 0.10.0
libtpu: 0.0.40
codegen_flags: <defaults>
</compile_context>

<pallas_src>
import jax
import jax.numpy as jnp
from jax.experimental import pallas as pl
from jax.experimental.pallas import tpu as pltpu

_SUBLANE = 8


def _round_up(n, m):
    return ((n + m - 1) // m) * m


def _choose_batch_tiling(B, tile_b_max):
    """Pick (tile_b, padded_B, n_steps): tile rows are a multiple of 8, batch
    padding stays small, and non-tiny batches get at least 2 grid steps so the
    'parallel' batch axis can span both v7x TensorCores."""
    n_steps = -(-B // tile_b_max)
    if n_steps < 2 and B >= 4 * _SUBLANE:
        n_steps = 2                       # megacore-friendly on v7x
    tile_b = _round_up(-(-B // n_steps), _SUBLANE)
    return tile_b, n_steps * tile_b, n_steps


def actor_kernel(x_ref, g_ref, w1x_ref, w1g_ref, b1_ref, w2_ref, b2_ref,
                 w3_ref, b3_ref, out_ref):
    # Layer 1: relu(x @ W1x + g @ W1g + b1) — split matmul replaces the
    # concat([x, g]); x/g already arrive in the weight dtype, accumulate f32.
    h = jnp.dot(x_ref[...], w1x_ref[...], preferred_element_type=jnp.float32)
    h = h + jnp.dot(g_ref[...], w1g_ref[...],
                    preferred_element_type=jnp.float32)
    h = jnp.maximum(h + b1_ref[...], 0.0)

    # Layer 2: relu(h @ W2 + b2)
    h = jnp.dot(h.astype(w2_ref.dtype), w2_ref[...],
                preferred_element_type=jnp.float32)
    h = jnp.maximum(h + b2_ref[...], 0.0)

    # Layer 3: Q-values.
    q = jnp.dot(h.astype(w3_ref.dtype), w3_ref[...],
                preferred_element_type=jnp.float32)
    q = q + b3_ref[...]

    # Numerically stable row softmax in f32; exact division -> rows sum to 1.
    m = jnp.max(q, axis=1, keepdims=True)
    e = jnp.exp(q - m)
    out_ref[...] = (e / jnp.sum(e, axis=1, keepdims=True)).astype(out_ref.dtype)


def prepare_params(params, state_dim, goal_dim, param_dtype=jnp.bfloat16):
    """Split W1 by (x, g) rows and cast weights to `param_dtype` (bf16
    recommended on all TPU generations).  Biases stay f32 (accumulation and
    softmax are f32)."""
    w1, b1, w2, b2, w3, b3 = params
    assert w1.shape[0] == state_dim + goal_dim
    w1x = w1[:state_dim].astype(param_dtype)
    w1g = w1[state_dim:].astype(param_dtype)
    w2p = w2.astype(param_dtype)
    w3p = w3.astype(param_dtype)
    b1p = b1.reshape(1, -1).astype(jnp.float32)
    b2p = b2.reshape(1, -1).astype(jnp.float32)
    b3p = b3.reshape(1, -1).astype(jnp.float32)
    return (w1x, w1g, b1p, w2p, b2p, w3p, b3p)


def actor_forward(x, g, prepared, action_dim, *, tile_b_max=1024):
    """x: [B, state_dim], g: [B, goal_dim] -> probs: [B, action_dim] (f32)."""
    w1x, w1g, b1, w2, b2, w3, b3 = prepared
    B, state_dim = x.shape
    goal_dim = g.shape[1]
    h1, h2 = w2.shape
    act_dtype = w1x.dtype          # stream activations in the weight dtype

    tile_b, bp, n_steps = _choose_batch_tiling(B, tile_b_max)

    xs = x.astype(act_dtype)
    gs = g.astype(act_dtype)
    if bp != B:                    # pad only the batch (sublane) dim
        xs = jnp.pad(xs, ((0, bp - B), (0, 0)))
        gs = jnp.pad(gs, ((0, bp - B), (0, 0)))

    # Weights / biases: constant index_map -> stay VMEM-resident across grid.
    def resident(a):
        return pl.BlockSpec(a.shape, lambda i: (0, 0))

    # VMEM budget from actual usage (double-buffered streams + resident
    # weights + in-kernel intermediates) with slack; never the full physical
    # VMEM (v7x has only 64 MiB per TensorCore).
    stream_bytes = tile_b * (state_dim * xs.dtype.itemsize
                             + goal_dim * gs.dtype.itemsize
                             + action_dim * 4)
    weight_bytes = sum(int(a.size) * a.dtype.itemsize for a in prepared)
    interm_bytes = 4 * tile_b * (h1 + h2 + action_dim) * 4
    vmem_limit = int(min(max(2 * (stream_bytes + weight_bytes) + interm_bytes
                             + (8 << 20), 16 << 20), 32 << 20))

    out = pl.pallas_call(
        actor_kernel,
        out_shape=jax.ShapeDtypeStruct((bp, action_dim), jnp.float32),
        grid_spec=pltpu.PrefetchScalarGridSpec(
            num_scalar_prefetch=0,
            grid=(n_steps,),
            in_specs=[
                pl.BlockSpec((tile_b, state_dim), lambda i: (i, 0)),
                pl.BlockSpec((tile_b, goal_dim), lambda i: (i, 0)),
                resident(w1x), resident(w1g), resident(b1),
                resident(w2), resident(b2),
                resident(w3), resident(b3),
            ],
            out_specs=pl.BlockSpec((tile_b, action_dim), lambda i: (i, 0)),
        ),
        compiler_params=pltpu.CompilerParams(
            dimension_semantics=("parallel",),   # batch tiles -> both v7x TCs
            vmem_limit_bytes=vmem_limit,
        ),
    )(xs, gs, w1x, w1g, b1, w2, b2, w3, b3)

    return out[:B] if bp != B else out


def init_params(key, state_dim, goal_dim, h1, h2, action_dim):
    in_dim = state_dim + goal_dim
    ks = jax.random.split(key, 6)
    scale = 0.1
    w1 = scale * jax.random.normal(ks[0], (in_dim, h1), jnp.float32)
    b1 = scale * jax.random.normal(ks[1], (1, h1), jnp.float32)
    w2 = scale * jax.random.normal(ks[2], (h1, h2), jnp.float32)
    b2 = scale * jax.random.normal(ks[3], (1, h2), jnp.float32)
    w3 = scale * jax.random.normal(ks[4], (h2, action_dim), jnp.float32)
    b3 = scale * jax.random.normal(ks[5], (1, action_dim), jnp.float32)
    return (w1, b1, w2, b2, w3, b3)


if __name__ == "__main__":
    key = jax.random.PRNGKey(0)
    k_x, k_g, k_p, k_x2, k_g2 = jax.random.split(key, 5)

    state_dim, goal_dim = 16, 8
    hidden1 = hidden2 = 32
    action_dim = 8

    params = init_params(k_p, state_dim, goal_dim, hidden1, hidden2, action_dim)

    def reference(x, g):
        w1, b1, w2, b2, w3, b3 = params
        xg = jnp.concatenate([x, g], axis=1)
        h = jnp.maximum(xg @ w1 + b1, 0.0)
        h = jnp.maximum(h @ w2 + b2, 0.0)
        return jax.nn.softmax(h @ w3 + b3, axis=1)

    # --- tiny batch, f32 weights --------------------------------------------
    batch = 2
    x = jax.random.normal(k_x, (batch, state_dim), jnp.float32)
    g = jax.random.normal(k_g, (batch, goal_dim), jnp.float32)
    prepared_f32 = prepare_params(params, state_dim, goal_dim, jnp.float32)
    probs = jax.block_until_ready(actor_forward(x, g, prepared_f32, action_dim))
    ref = reference(x, g)
    assert probs.shape == (batch, action_dim)
    assert jnp.allclose(probs, ref, atol=1e-4), "mismatch vs reference (f32)"
    assert jnp.allclose(jnp.sum(probs, axis=1), 1.0, atol=1e-4)

    # --- multi-tile batch, bf16 weights + bf16 streamed activations ---------
    batch2 = 40    # -> 2 grid steps (exercises tiling / megacore path)
    x2 = jax.random.normal(k_x2, (batch2, state_dim), jnp.float32)
    g2 = jax.random.normal(k_g2, (batch2, goal_dim), jnp.float32)
    prepared_bf16 = prepare_params(params, state_dim, goal_dim, jnp.bfloat16)
    probs2 = jax.block_until_ready(
        actor_forward(x2, g2, prepared_bf16, action_dim))
    ref2 = reference(x2, g2)
    assert probs2.shape == (batch2, action_dim)
    assert jnp.allclose(probs2, ref2, atol=3e-2), "mismatch vs reference (bf16)"
    assert jnp.allclose(jnp.sum(probs2, axis=1), 1.0, atol=1e-3)

    print("KERNEL_OK")
</pallas_src>

<mosaic_0001>
module attributes {stable_mosaic.version = 11 : i64} {
  func.func @actor_kernel(%arg0: i32, %arg1: memref<8x16xf32, #tpu.memory_space<vmem>>, %arg2: memref<8x8xf32, #tpu.memory_space<vmem>>, %arg3: memref<16x32xf32, #tpu.memory_space<vmem>>, %arg4: memref<8x32xf32, #tpu.memory_space<vmem>>, %arg5: memref<1x32xf32, #tpu.memory_space<vmem>>, %arg6: memref<32x32xf32, #tpu.memory_space<vmem>>, %arg7: memref<1x32xf32, #tpu.memory_space<vmem>>, %arg8: memref<32x8xf32, #tpu.memory_space<vmem>>, %arg9: memref<1x8xf32, #tpu.memory_space<vmem>>, %arg10: memref<8x8xf32, #tpu.memory_space<vmem>>) attributes {dimension_semantics = [#tpu.dimension_semantics<parallel>], iteration_bounds = array<i64: 1>, scalar_prefetch = 0 : i64, scratch_operands = 0 : i64, tpu.core_type = #tpu.core_type<tc>, window_params = [{transform_indices = @transform_0, window_bounds = array<i64: 8, 16>}, {transform_indices = @transform_1, window_bounds = array<i64: 8, 8>}, {pipeline_mode = #tpu.pipeline_mode<synchronous>, transform_indices = @transform_2, window_bounds = array<i64: 16, 32>}, {pipeline_mode = #tpu.pipeline_mode<synchronous>, transform_indices = @transform_3, window_bounds = array<i64: 8, 32>}, {pipeline_mode = #tpu.pipeline_mode<synchronous>, transform_indices = @transform_4, window_bounds = array<i64: 1, 32>}, {pipeline_mode = #tpu.pipeline_mode<synchronous>, transform_indices = @transform_5, window_bounds = array<i64: 32, 32>}, {pipeline_mode = #tpu.pipeline_mode<synchronous>, transform_indices = @transform_6, window_bounds = array<i64: 1, 32>}, {pipeline_mode = #tpu.pipeline_mode<synchronous>, transform_indices = @transform_7, window_bounds = array<i64: 32, 8>}, {pipeline_mode = #tpu.pipeline_mode<synchronous>, transform_indices = @transform_8, window_bounds = array<i64: 1, 8>}, {transform_indices = @transform_9, window_bounds = array<i64: 8, 8>}]} {
    %c0 = arith.constant 0 : index
    %c0_0 = arith.constant 0 : index
    %0 = vector.load %arg1[%c0, %c0_0] : memref<8x16xf32, #tpu.memory_space<vmem>>, vector<8x16xf32>
    %c0_1 = arith.constant 0 : index
    %c0_2 = arith.constant 0 : index
    %1 = vector.load %arg3[%c0_1, %c0_2] : memref<16x32xf32, #tpu.memory_space<vmem>>, vector<16x32xf32>
    %cst = arith.constant dense<0.000000e+00> : vector<8x32xf32>
    %2 = tpu.matmul %0, %1, %cst {dimension_numbers = #tpu.dot_dimension_numbers<[1], [0], [0], [1], [0, 0, 1, 1], [], []>} : vector<8x16xf32>, vector<16x32xf32>, vector<8x32xf32> -> vector<8x32xf32>
    %c0_3 = arith.constant 0 : index
    %c0_4 = arith.constant 0 : index
    %3 = vector.load %arg2[%c0_3, %c0_4] : memref<8x8xf32, #tpu.memory_space<vmem>>, vector<8x8xf32>
    %c0_5 = arith.constant 0 : index
    %c0_6 = arith.constant 0 : index
    %4 = vector.load %arg4[%c0_5, %c0_6] : memref<8x32xf32, #tpu.memory_space<vmem>>, vector<8x32xf32>
    %cst_7 = arith.constant dense<0.000000e+00> : vector<8x32xf32>
    %5 = tpu.matmul %3, %4, %cst_7 {dimension_numbers = #tpu.dot_dimension_numbers<[1], [0], [0], [1], [0, 0, 1, 1], [], []>} : vector<8x8xf32>, vector<8x32xf32>, vector<8x32xf32> -> vector<8x32xf32>
    %6 = arith.addf %2, %5 : vector<8x32xf32>
    %c0_8 = arith.constant 0 : index
    %c0_9 = arith.constant 0 : index
    %7 = vector.load %arg5[%c0_8, %c0_9] : memref<1x32xf32, #tpu.memory_space<vmem>>, vector<1x32xf32>
    %8 = vector.broadcast %7 : vector<1x32xf32> to vector<8x32xf32>
    %9 = arith.addf %6, %8 : vector<8x32xf32>
    %cst_10 = arith.constant 0.000000e+00 : f32
    %10 = vector.broadcast %cst_10 : f32 to vector<8x32xf32>
    %11 = arith.maximumf %9, %10 : vector<8x32xf32>
    %c0_11 = arith.constant 0 : index
    %c0_12 = arith.constant 0 : index
    %12 = vector.load %arg6[%c0_11, %c0_12] : memref<32x32xf32, #tpu.memory_space<vmem>>, vector<32x32xf32>
    %cst_13 = arith.constant dense<0.000000e+00> : vector<8x32xf32>
    %13 = tpu.matmul %11, %12, %cst_13 {dimension_numbers = #tpu.dot_dimension_numbers<[1], [0], [0], [1], [0, 0, 1, 1], [], []>} : vector<8x32xf32>, vector<32x32xf32>, vector<8x32xf32> -> vector<8x32xf32>
    %c0_14 = arith.constant 0 : index
    %c0_15 = arith.constant 0 : index
    %14 = vector.load %arg7[%c0_14, %c0_15] : memref<1x32xf32, #tpu.memory_space<vmem>>, vector<1x32xf32>
    %15 = vector.broadcast %14 : vector<1x32xf32> to vector<8x32xf32>
    %16 = arith.addf %13, %15 : vector<8x32xf32>
    %cst_16 = arith.constant 0.000000e+00 : f32
    %17 = vector.broadcast %cst_16 : f32 to vector<8x32xf32>
    %18 = arith.maximumf %16, %17 : vector<8x32xf32>
    %c0_17 = arith.constant 0 : index
    %c0_18 = arith.constant 0 : index
    %19 = vector.load %arg8[%c0_17, %c0_18] : memref<32x8xf32, #tpu.memory_space<vmem>>, vector<32x8xf32>
    %cst_19 = arith.constant dense<0.000000e+00> : vector<8x8xf32>
    %20 = tpu.matmul %18, %19, %cst_19 {dimension_numbers = #tpu.dot_dimension_numbers<[1], [0], [0], [1], [0, 0, 1, 1], [], []>} : vector<8x32xf32>, vector<32x8xf32>, vector<8x8xf32> -> vector<8x8xf32>
    %c0_20 = arith.constant 0 : index
    %c0_21 = arith.constant 0 : index
    %21 = vector.load %arg9[%c0_20, %c0_21] : memref<1x8xf32, #tpu.memory_space<vmem>>, vector<1x8xf32>
    %22 = vector.broadcast %21 : vector<1x8xf32> to vector<8x8xf32>
    %23 = arith.addf %20, %22 : vector<8x8xf32>
    %cst_22 = arith.constant dense<0xFF800000> : vector<8xf32>
    %24 = vector.multi_reduction <maximumf>, %23, %cst_22 [1] : vector<8x8xf32> to vector<8xf32>
    %25 = vector.shape_cast %24 : vector<8xf32> to vector<8x1xf32>
    %26 = vector.broadcast %25 : vector<8x1xf32> to vector<8x8xf32>
    %27 = arith.subf %23, %26 : vector<8x8xf32>
    %28 = math.exp %27 : vector<8x8xf32>
    %cst_23 = arith.constant dense<0.000000e+00> : vector<8xf32>
    %29 = vector.multi_reduction <add>, %28, %cst_23 [1] : vector<8x8xf32> to vector<8xf32>
    %30 = vector.shape_cast %29 : vector<8xf32> to vector<8x1xf32>
    %31 = vector.broadcast %30 : vector<8x1xf32> to vector<8x8xf32>
    %32 = arith.divf %28, %31 : vector<8x8xf32>
    %c0_24 = arith.constant 0 : index
    %c0_25 = arith.constant 0 : index
    %33 = vector.load %arg10[%c0_24, %c0_25] : memref<8x8xf32, #tpu.memory_space<vmem>>, vector<8x8xf32>
    tpu.vector_store %arg10[%c0_24, %c0_25], %32 {strides = array<i32>} : memref<8x8xf32, #tpu.memory_space<vmem>>, vector<8x8xf32>,
    return
  }
  func.func @transform_0(%arg0: i32) -> (i32, i32) {
    %c0_i32 = arith.constant 0 : i32
    %c0_i32_0 = arith.constant 0 : i32
    return %arg0, %c0_i32 : i32, i32
  }
  func.func @transform_1(%arg0: i32) -> (i32, i32) {
    %c0_i32 = arith.constant 0 : i32
    %c0_i32_0 = arith.constant 0 : i32
    return %arg0, %c0_i32 : i32, i32
  }
  func.func @transform_2(%arg0: i32) -> (i32, i32) {
    %c0_i32 = arith.constant 0 : i32
    %c0_i32_0 = arith.constant 0 : i32
    %c0_i32_1 = arith.constant 0 : i32
    return %c0_i32, %c0_i32_0 : i32, i32
  }
  func.func @transform_3(%arg0: i32) -> (i32, i32) {
    %c0_i32 = arith.constant 0 : i32
    %c0_i32_0 = arith.constant 0 : i32
    %c0_i32_1 = arith.constant 0 : i32
    return %c0_i32, %c0_i32_0 : i32, i32
  }
  func.func @transform_4(%arg0: i32) -> (i32, i32) {
    %c0_i32 = arith.constant 0 : i32
    %c0_i32_0 = arith.constant 0 : i32
    %c0_i32_1 = arith.constant 0 : i32
    return %c0_i32, %c0_i32_0 : i32, i32
  }
  func.func @transform_5(%arg0: i32) -> (i32, i32) {
    %c0_i32 = arith.constant 0 : i32
    %c0_i32_0 = arith.constant 0 : i32
    %c0_i32_1 = arith.constant 0 : i32
    return %c0_i32, %c0_i32_0 : i32, i32
  }
  func.func @transform_6(%arg0: i32) -> (i32, i32) {
    %c0_i32 = arith.constant 0 : i32
    %c0_i32_0 = arith.constant 0 : i32
    %c0_i32_1 = arith.constant 0 : i32
    return %c0_i32, %c0_i32_0 : i32, i32
  }
  func.func @transform_7(%arg0: i32) -> (i32, i32) {
    %c0_i32 = arith.constant 0 : i32
    %c0_i32_0 = arith.constant 0 : i32
    %c0_i32_1 = arith.constant 0 : i32
    return %c0_i32, %c0_i32_0 : i32, i32
  }
  func.func @transform_8(%arg0: i32) -> (i32, i32) {
    %c0_i32 = arith.constant 0 : i32
    %c0_i32_0 = arith.constant 0 : i32
    %c0_i32_1 = arith.constant 0 : i32
    return %c0_i32, %c0_i32_0 : i32, i32
  }
  func.func @transform_9(%arg0: i32) -> (i32, i32) {
    %c0_i32 = arith.constant 0 : i32
    %c0_i32_0 = arith.constant 0 : i32
    return %arg0, %c0_i32 : i32, i32
  }
}

</mosaic_0001>

<bundles_post_ra>
// kernel: tpu_custom_call.1
= control target key start
LH: loop header
LB: loop body
LE: loop exit
PB: predicated region body
PF: predicated region fallthrough
CT: control target
= control target key end

     0   :  { %14 = vsyncpa [#allocation3], 0  ;;  %s712_s0 = inlined_call_operand.vmem [shape: f32[8,16], index: 0, kind: input, shape index: {}]   ;;  %s713_s1 = inlined_call_operand.hbm [shape: f32[8,8], index: 1, kind: input, shape index: {}]   ;;  %s714_s2 = inlined_call_operand.vmem [shape: f32[16,32], index: 2, kind: input, shape index: {}]   ;;  %s715_s3 = inlined_call_operand.hbm [shape: f32[8,32], index: 3, kind: input, shape index: {}]   ;;  %s716_s4 = inlined_call_operand.vmem [shape: f32[1,32], index: 4, kind: input, shape index: {}]   ;;  %s717_s5 = inlined_call_operand.vmem [shape: f32[32,32], index: 5, kind: input, shape index: {}]   ;;  %s718_s6 = inlined_call_operand.vmem [shape: f32[1,32], index: 6, kind: input, shape index: {}]   ;;  %s719_s7 = inlined_call_operand.vmem [shape: f32[32,8], index: 7, kind: input, shape index: {}]   ;;  %s720_s8 = inlined_call_operand.vmem [shape: f32[1,8], index: 8, kind: input, shape index: {}]   ;;  %s721_s9 = inlined_call_operand.hbm [shape: f32[8,8], index: 9, kind: output, shape index: {}]  }
   0x1   :  { %15 = vsyncpa [#allocation6], 0 }
   0x2   :  { %16 = vsyncpa [#allocation4], 0  ;;  %s570_s30 = smov [#allocation2]   ;;  %s571_s11 = smov [#allocation5]  }
   0x3   :  { %s25_s10 = sshll.u32 %s570_s30, 4  ;;  %s37_s12 = sshll.u32 %s571_s11, 4  ;;  %s26_s10 = int_to_ptr.vmem [resolvable:$true] %s25_s10  ;;  %s38_s12 = int_to_ptr.vmem [resolvable:$true] %s37_s12 }
   0x4   :  { %s498_s15 = scalar_lea.hbm %s713_s1, 128 }
   0x5   :  { %p499_p0 = scmp.ne.s32.totalorder %s713_s1, %s498_s15  ;;  %p502_p1 = scmp.lt.u32.totalorder %s498_s15, %s713_s1 }
   0x7   :  { %p504_p2 = pnand %p502_p1, %p499_p0 }
   0x9   :  { %507 = shalt.err (!%p504_p2)
}
   0xa   :  { %s508_s20 = scalar_lea.vmem %s26_s10, 128  ;;  %p513_p4 = scmp.lt.s32.totalorder %s26_s10, %s26_s10 }
   0xb   :  { %p509_p3 = scmp.ne.s32.totalorder %s26_s10, %s508_s20  ;;  %p514_p5 = scmp.lt.s32.totalorder %s508_s20, %s508_s20 }
   0xd   :  { %p515_p6 = por %p514_p5, %p513_p4 }
   0xf   :  { %p516_p7 = pnand %p515_p6, %p509_p3 }
  0x11   :  { %519 = shalt.err (!%p516_p7)
}
  0x12   :  { %28 = dma.hbm_to_vmem [thread:$0]  %s713_s1, 128, %s26_s10, [#allocation3]  }
  0x13   :  { %s520_s25 = scalar_lea.hbm %s715_s3, 128 }
  0x14   :  { %p521_p8 = scmp.ne.s32.totalorder %s715_s3, %s520_s25  ;;  %p524_p9 = scmp.lt.u32.totalorder %s520_s25, %s715_s3 }
  0x16   :  { %p526_p10 = pnand %p524_p9, %p521_p8 }
  0x18   :  { %529 = shalt.err (!%p526_p10)
}
  0x19   :  { %s530_s30 = scalar_lea.vmem %s38_s12, 128  ;;  %p535_p12 = scmp.lt.s32.totalorder %s38_s12, %s38_s12 }
  0x1a   :  { %p531_p11 = scmp.ne.s32.totalorder %s38_s12, %s530_s30  ;;  %p536_p13 = scmp.lt.s32.totalorder %s530_s30, %s530_s30 }
  0x1c   :  { %p537_p0 = por %p536_p13, %p535_p12 }
  0x1e   :  { %p538_p1 = pnand %p537_p0, %p531_p11 }
  0x20   :  { %541 = shalt.err (!%p538_p1)
}
  0x21   :  { %40 = dma.hbm_to_vmem [thread:$0]  %s715_s3, 128, %s38_s12, [#allocation6]  }
  0x22   :  { %564 = dma.done.wait [#allocation3], 128  }
  0x23   :  { %565 = vsyncadd [#allocation3], 4294967168 }
  0x24   :  { %566 = dma.done.wait [#allocation6], 128  }
  0x25   :  { %567 = vsyncadd [#allocation6], 4294967168  ;;  %v572_v0 = vmov 0.0|0.0   ;;  %v573_v1 = vmov 0.0   ;;  %vm574_vm0 = vmmov 0   ;;  %vm62_vm1 = vcmask 64512  }
  0x26   :  { %473 = vmatprep.subr.bf16.mxu1 %v572_v0  ;;  %439 = vmatprep.subr.mxu0 %v573_v1  ;;  %v58_v2 = vld [vmem:[%s714_s2] sm:$0xff]  ;;  %v59_v3 = vld [vmem:[%s714_s2 + $0x8] sm:$0xff]  ;;  %vm136_vm2 = vcmask 130048   ;;  %v221_v11 = vld [vmem:[%s717_s5 + $0x10] sm:$0xff]  ;;  %vm230_vm3 = vcmask 261120  }
  0x27   :  { %441 = vmatprep.mubr.msk.f32.mxu0 %vm574_vm0, %v573_v1  ;;  %448 = vmatprep.mubr.msk.f32.mxu1 %vm574_vm0, %v573_v1  ;;  %v61_v4 = vld [vmem:[#allocation5] sm:$0xff]  ;;  %v474_v5 = vpack.c.bf16 %v59_v3, %v58_v2  ;;  %v60_v6 = vld [vmem:[#allocation2] sm:$0xff]  ;;  %v222_v12 = vld [vmem:[%s717_s5 + $0x18] sm:$0xff] }
  0x28   :  { %440 = vmatpush3.msra.mxu0 %v61_v4  ;;  %v57_v7 = vld [vmem:[%s712_s0] sm:$0xff]  ;;  %v220_v9 = vld [vmem:[%s717_s5 + $0x8] sm:$0xff]  ;;  %v480_v13 = vpack.c.bf16 %v222_v12, %v221_v11  ;;  %v307_v25 = vld [vmem:[%s719_s7 + $0x10] sm:$0xff] }
  0x29   :  { %442 = vmatmul.mubr.msk.f32.vlgmr.msra.gmra.mrb[0].mxu0 %vm62_vm1, %v60_v6  ;;  %476 = vmatprep.subr.bf16.mxu0 %v572_v0  ;;  %v219_v8 = vld [vmem:[%s717_s5] sm:$0xff]  ;;  %v306_v15 = vld [vmem:[%s719_s7 + $0x8] sm:$0xff]  ;;  %v308_v26 = vld [vmem:[%s719_s7 + $0x18] sm:$0xff] }
  0x2a   :  { %475 = vmatpush3.bf16.msra.mxu1 %v474_v5  ;;  %459 = vmatprep.mubr.msk.f32.mxu0 %vm574_vm0, %v573_v1  ;;  %v477_v10 = vpack.c.bf16 %v220_v9, %v219_v8  ;;  %v305_v14 = vld [vmem:[%s719_s7] sm:$0xff]  ;;  %v486_v27 = vpack.c.bf16 %v308_v26, %v307_v25 }
  0x2b   :  { %482 = vmatprep.subr.bf16.mxu1 %v572_v0  ;;  %v483_v16 = vpack.c.bf16 %v306_v15, %v305_v14  ;;  %v419_v20 = vld [vmem:[%s716_s4] ss:$0 sm:$0xff] }
  0x2c   :  { %478 = vmatpush3.bf16.msra.mxu0 %v477_v10  ;;  %v420_v28 = vld [vmem:[%s718_s6] ss:$0 sm:$0xff]  ;;  %s575_s6 = smov [#allocation7]  }
  0x2d   :  { %449 = vmatmul.mubr.msk.f32.vlgmr.msra.gmra.mrb[0].mxu1 %vm136_vm2, %v57_v7  ;;  %479 = vmatprep.subr.bf16.mxu0 %v572_v0  ;;  %v422_v33 = vld [vmem:[%s720_s8] ss:$0 sm:$0xff]  ;;  %s407_s7 = sshll.u32 %s575_s6, 4  ;;  %s408_s7 = int_to_ptr.vmem [resolvable:$true] %s407_s7 }
  0x2e   :  { %470 = vmatprep.mubr.msk.f32.mxu1 %vm574_vm0, %v573_v1  ;;  %484 = vmatpush3.bf16.msra.mxu1 %v483_v16  ;;  %s542_s8 = scalar_lea.vmem %s408_s7, 128  ;;  %p547_p3 = scmp.lt.s32.totalorder %s408_s7, %s408_s7 }
  0x2f   :  { %485 = vmatprep.subr.bf16.mxu1 %v572_v0  ;;  %p543_p2 = scmp.ne.s32.totalorder %s408_s7, %s542_s8  ;;  %p548_p4 = scmp.lt.s32.totalorder %s542_s8, %s542_s8 }
  0x30   :  { %481 = vmatpush3.bf16.msra.mxu0 %v480_v13 }
  0x31   :  { %p549_p5 = por %p548_p4, %p547_p3 }
  0x32   :  { %487 = vmatpush3.bf16.msra.mxu1 %v486_v27 }
  0x33   :  { %p550_p6 = pnand %p549_p5, %p543_p2 }
  0xfc   :  { %v132_v17 = vpop.f32.mrb[0].mxu0 }
  0xfd   :  { %v443_v18 = vpop.f32.mrb[1].mxu0 }
 0x100   :  { %v206_v19 = vpop.f32.mrb[0].mxu1 }
 0x101   :  { %v207_v21 = vadd.f32 %v206_v19, %v132_v17  ;;  %v450_v22 = vpop.f32.mrb[1].mxu1 }
 0x103   :  { %v217_v23 = vadd.f32 %v419_v20, %v207_v21 }
 0x105   :  { %v218_v24 = vmax.f32 %v217_v23, 0.0 }
 0x107   :  { %460 = vmatmul.mubr.msk.f32.vlgmr.msra.gmra.mrb[2].mxu0 %vm230_vm3, %v218_v24 }
 0x1da   :  { %v300_v29 = vpop.f32.mrb[2].mxu0 }
 0x1db   :  { %v301_v30 = vadd.f32 %v420_v28, %v300_v29  ;;  %v461_v31 = vpop.f32.mrb[3].mxu0 }
 0x1dd   :  { %v304_v32 = vmax.f32 %v301_v30, 0.0 }
 0x1df   :  { %471 = vmatmul.mubr.msk.f32.vlgmr.msra.gmra.mrb[2].mxu1 %vm230_vm3, %v304_v32 }
 0x2b2   :  { %v385_v34 = vpop.f32.mrb[2].mxu1 }
 0x2b3   :  { %v386_v35 = vadd.f32 %v422_v33, %v385_v34  ;;  %v472_v36 = vpop.f32.mrb[3].mxu1 }
 0x2b5   :  { %v389_v37 = vsel %vm62_vm1, %v386_v35, -inf }
 0x2b6   :  { %390 = vmax.xlane.f32.xlu0 %v389_v37 }
 0x343   :  { %v391_v38 = vpop.xlane.xlu0 %390 }
 0x344   :  { %v392_v39 = vsub.f32 %v386_v35, %v391_v38 }
 0x346   :  { %v393_v40 = vmul.f32 1.442695, %v392_v39 }
 0x348   :  { %494 = vpow2.f32 %v393_v40 }
 0x352   :  { %v495_v41 = vpop.eup %494 }
 0x353   :  { %v395_v42 = vsel %vm62_vm1, %v495_v41, 0.0 }
 0x354   :  { %396 = vadd.xlane.f32.xlu0 %v395_v42 }
 0x3e1   :  { %v397_v43 = vpop.xlane.xlu0 %396 }
 0x3e2   :  { %496 = vrcp.f32 %v397_v43 }
 0x3ec   :  { %v497_v44 = vpop.eup %496 }
 0x3ed   :  { %v399_v45 = vmul.f32 %v497_v44, %v495_v41 }
 0x3ef   :  { %400 = vst.msk [vmem:[#allocation7] sm:$0xff] %vm62_vm1, %v399_v45 }
 0x3f0   :  { %553 = shalt.err (!%p550_p6)
}
 0x3f1   :  { %s554_s3 = scalar_lea.hbm %s721_s9, 128 }
 0x3f2   :  { %p555_p7 = scmp.ne.s32.totalorder %s721_s9, %s554_s3  ;;  %p558_p8 = scmp.lt.u32.totalorder %s554_s3, %s721_s9 }
 0x3f4   :  { %p560_p9 = pnand %p558_p8, %p555_p7 }
 0x3f6   :  { %563 = shalt.err (!%p560_p9)
}
 0x3f7   :  { %410 = dma.vmem_to_hbm [thread:$0]  %s408_s7, 128, %s721_s9, [#allocation4]  }
 0x3f8   :  { %568 = dma.done.wait [#allocation4], 128  }
 0x3f9   :  { %569 = vsyncadd [#allocation4], 4294967168 }
 0x3fa   :  { %414 = vsyncpa [#allocation3], 1 }
 0x3fb   :  { %415 = vsyncpa [#allocation6], 1 }
 0x3fc   :  { %416 = vsyncpa [#allocation4], 1 }

</bundles_post_ra>
